<compile_context>
chip_gen: v6e
topology: v6e:2x2x1
jax: 0.10.0
libtpu: 0.0.40
codegen_flags: <defaults>
</compile_context>

<pallas_src>
import functools

import jax
import jax.numpy as jnp
from jax.experimental import pallas as pl
from jax.experimental.pallas import tpu as pltpu


def _choose_row_tile(n):
    """Patch-row tile: whole image when it is small, else ~512 rows (x8)."""
    if n <= 1024:
        return n
    return 512


def _choose_batch_tile(b, n_tiles, tn):
    """Images per grid step: amortize per-step overhead but keep >= 4 total
    grid steps so both v7x TensorCores (and the software pipeline) have work."""
    best = 1
    for d in range(1, b + 1):
        if b % d:
            continue
        if d * tn > 1024:          # keep per-step slab modest (VMEM headroom)
            break
        if d == 1 or n_tiles * (b // d) >= 4:
            best = d
    return best


def _embed_kernel(x_ref, w_ref, pb_ref, o_ref):
    # x_ref : (bt, tn, K)  patch pixels for `bt` images (gemm dtype, un-padded K)
    # w_ref : (K, D)       conv weight as a matmul weight (gemm dtype)
    # pb_ref: (tn, D)      f32 position embedding with the conv bias folded in
    # o_ref : (bt, tn, D)  output embeddings
    w = w_ref[...]
    pb = pb_ref[...]
    for i in range(x_ref.shape[0]):      # static unroll: plain 2-D MXU dots
        acc = jnp.dot(x_ref[i], w, preferred_element_type=jnp.float32)
        o_ref[i] = (acc + pb).astype(o_ref.dtype)


def siglip_vision_embeddings(pixel_values, conv_weight, conv_bias,
                             pos_embedding, patch_size, *,
                             gemm_dtype=jnp.bfloat16,
                             row_tile=None, batch_tile=None):
    """pixel_values : (B, C, H, W)  NCHW (as in the PyTorch module)
       conv_weight  : (D, C, P, P)  PyTorch Conv2d weight layout
       conv_bias    : (D,)
       pos_embedding: (N, D)        nn.Embedding weight, N = (H//P)*(W//P)
       returns      : (B, N, D)
    """
    B, C, H, W_img = pixel_values.shape
    D = conv_weight.shape[0]
    P = patch_size
    Hp, Wp = H // P, W_img // P
    N = Hp * Wp
    K = C * P * P
    out_dtype = pixel_values.dtype

    # ---- layout-only glue (matches conv -> flatten(2) -> transpose(1,2)) ----
    # Single fused XLA pass: read f32 pixels once, write bf16 patches once.
    # (B, C, Hp, P, Wp, P) -> (B, Hp, Wp, C, P, P) -> (B, N, K)
    # TODO(synk): fuse this patchify into the kernel (per-patch-row strip DMA +
    # in-kernel relayout) to remove this extra HBM pass entirely.
    patches = pixel_values.reshape(B, C, Hp, P, Wp, P)
    patches = patches.transpose(0, 2, 4, 1, 3, 5).reshape(B, N, K)
    patches = patches.astype(gemm_dtype)

    # Conv weight (D, C, P, P) -> (K, D) so that patches @ w == conv output.
    w = conv_weight.reshape(D, K).T.astype(gemm_dtype)
    # Fold the conv bias into the f32 position table once; kernel does a single
    # f32 add and a single downcast.
    pos_bias = (pos_embedding.astype(jnp.float32)
                + conv_bias.astype(jnp.float32)[None, :])

    # ---- tiling ----
    tn = _choose_row_tile(N) if row_tile is None else row_tile
    n_tiles = pl.cdiv(N, tn)
    bt = (_choose_batch_tile(B, n_tiles, tn)
          if batch_tile is None else batch_tile)
    b_tiles = pl.cdiv(B, bt)
    # Patch-row axis OUTER so pos_bias's block index is constant across the
    # inner batch loop => DMA'd once per row tile (not once per image).
    grid = (n_tiles, b_tiles)

    gemm_bytes = jnp.dtype(gemm_dtype).itemsize
    out_bytes = jnp.dtype(out_dtype).itemsize
    vmem_needed = (2 * bt * tn * K * gemm_bytes      # patch slabs (double-buffered)
                   + 2 * K * D * gemm_bytes          # weight buffers
                   + 2 * tn * D * 4                  # pos+bias tiles (f32)
                   + 2 * bt * tn * D * out_bytes)    # output slabs
    try:
        vmem_cap = int(pltpu.get_tpu_info().vmem_capacity_bytes)
    except Exception:
        vmem_cap = 64 * 2**20                        # conservative (v7x-sized)
    # Leave ~25% headroom for compiler-internal scratch (~48 MiB cap on v7x).
    vmem_limit = int(min((vmem_cap * 3) // 4,
                         max(32 * 2**20, 2 * vmem_needed)))

    cost = pl.CostEstimate(
        flops=2 * B * N * K * D,
        transcendentals=0,
        bytes_accessed=(B * N * K * gemm_bytes       # patches, read once
                        + K * D * gemm_bytes         # weight, read once
                        + N * D * 4                  # pos+bias, read once
                        + B * N * D * out_bytes),    # output, written once
    )

    out = pl.pallas_call(
        _embed_kernel,
        out_shape=jax.ShapeDtypeStruct((B, N, D), out_dtype),
        grid_spec=pltpu.PrefetchScalarGridSpec(
            num_scalar_prefetch=0,
            grid=grid,
            in_specs=[
                pl.BlockSpec((bt, tn, K), lambda n, b: (b, n, 0)),
                pl.BlockSpec((K, D), lambda n, b: (0, 0)),
                pl.BlockSpec((tn, D), lambda n, b: (n, 0)),
            ],
            out_specs=pl.BlockSpec((bt, tn, D), lambda n, b: (b, n, 0)),
        ),
        compiler_params=pltpu.CompilerParams(
            dimension_semantics=("parallel", "parallel"),
            vmem_limit_bytes=vmem_limit,
        ),
        cost_estimate=cost,
    )(patches, w, pos_bias)
    return out


def _reference(pixel_values, conv_weight, conv_bias, pos_embedding, patch_size):
    # Pure-JAX f32 reference of the PyTorch forward (conv via dot on patches).
    B, C, H, W_img = pixel_values.shape
    D = conv_weight.shape[0]
    P = patch_size
    Hp, Wp = H // P, W_img // P
    N = Hp * Wp
    K = C * P * P
    patches = pixel_values.reshape(B, C, Hp, P, Wp, P)
    patches = patches.transpose(0, 2, 4, 1, 3, 5).reshape(B, N, K)
    w = conv_weight.reshape(D, K).T
    out = patches.astype(jnp.float32) @ w.astype(jnp.float32)
    out = out + conv_bias[None, None, :] + pos_embedding[None, :, :]
    return out.astype(pixel_values.dtype)


if __name__ == "__main__":
    # Small config consistent with the module:
    # num_channels=3, image_size=16, patch_size=4 -> num_patches=16, hidden=128
    B, C, IMG, P, D = 2, 3, 16, 4, 128
    N = (IMG // P) ** 2

    key = jax.random.PRNGKey(0)
    k1, k2, k3, k4 = jax.random.split(key, 4)
    pixel_values = jax.random.normal(k1, (B, C, IMG, IMG), dtype=jnp.float32)
    conv_weight = jax.random.normal(k2, (D, C, P, P), dtype=jnp.float32) * 0.02
    conv_bias = jax.random.normal(k3, (D,), dtype=jnp.float32) * 0.02
    pos_embedding = jax.random.normal(k4, (N, D), dtype=jnp.float32) * 0.02

    fn = jax.jit(functools.partial(siglip_vision_embeddings, patch_size=P))
    out = fn(pixel_values, conv_weight, conv_bias, pos_embedding)
    out = jax.block_until_ready(out)

    ref = _reference(pixel_values, conv_weight, conv_bias, pos_embedding, P)
    assert out.shape == (B, N, D)
    # bf16 GEMM with f32 accumulation vs f32 reference -> loosened tolerance.
    assert jnp.allclose(out, ref, atol=1e-2, rtol=1e-2)
    print("KERNEL_OK")
</pallas_src>

<mosaic_0001>
module attributes {stable_mosaic.version = 11 : i64} {
  func.func @_embed_kernel(%arg0: i32, %arg1: i32, %arg2: memref<1x16x48xbf16, #tpu.memory_space<vmem>>, %arg3: memref<48x128xbf16, #tpu.memory_space<vmem>>, %arg4: memref<16x128xf32, #tpu.memory_space<vmem>>, %arg5: memref<1x16x128xf32, #tpu.memory_space<vmem>>) attributes {dimension_semantics = [#tpu.dimension_semantics<parallel>, #tpu.dimension_semantics<parallel>], iteration_bounds = array<i64: 1, 2>, scalar_prefetch = 0 : i64, scratch_operands = 0 : i64, tpu.core_type = #tpu.core_type<tc>, window_params = [{transform_indices = @transform_0, window_bounds = array<i64: 1, 16, 48>}, {pipeline_mode = #tpu.pipeline_mode<synchronous>, transform_indices = @transform_1, window_bounds = array<i64: 48, 128>}, {transform_indices = @transform_2, window_bounds = array<i64: 16, 128>}, {transform_indices = @transform_3, window_bounds = array<i64: 1, 16, 128>}]} {
    %c0 = arith.constant 0 : index
    %c0_0 = arith.constant 0 : index
    %0 = vector.load %arg3[%c0, %c0_0] : memref<48x128xbf16, #tpu.memory_space<vmem>>, vector<48x128xbf16>
    %c0_1 = arith.constant 0 : index
    %c0_2 = arith.constant 0 : index
    %1 = vector.load %arg4[%c0_1, %c0_2] : memref<16x128xf32, #tpu.memory_space<vmem>>, vector<16x128xf32>
    %c0_3 = arith.constant 0 : index
    %c0_4 = arith.constant 0 : index
    %c0_5 = arith.constant 0 : index
    %2 = vector.load %arg2[%c0_3, %c0_4, %c0_5] : memref<1x16x48xbf16, #tpu.memory_space<vmem>>, vector<1x16x48xbf16>
    %3 = vector.shape_cast %2 : vector<1x16x48xbf16> to vector<16x48xbf16>
    %cst = arith.constant dense<0.000000e+00> : vector<16x128xf32>
    %4 = tpu.matmul %3, %0, %cst {dimension_numbers = #tpu.dot_dimension_numbers<[1], [0], [0], [1], [0, 0, 1, 1], [], []>} : vector<16x48xbf16>, vector<48x128xbf16>, vector<16x128xf32> -> vector<16x128xf32>
    %5 = arith.addf %4, %1 : vector<16x128xf32>
    %c0_6 = arith.constant 0 : index
    %c0_7 = arith.constant 0 : index
    %c0_8 = arith.constant 0 : index
    %6 = vector.load %arg5[%c0_6, %c0_7, %c0_8] : memref<1x16x128xf32, #tpu.memory_space<vmem>>, vector<1x16x128xf32>
    %7 = vector.shape_cast %6 : vector<1x16x128xf32> to vector<16x128xf32>
    %8 = vector.shape_cast %5 : vector<16x128xf32> to vector<1x16x128xf32>
    tpu.vector_store %arg5[%c0_6, %c0_7, %c0_8], %8 {strides = array<i32>} : memref<1x16x128xf32, #tpu.memory_space<vmem>>, vector<1x16x128xf32>,
    return
  }
  func.func @transform_0(%arg0: i32, %arg1: i32) -> (i32, i32, i32) {
    %c0_i32 = arith.constant 0 : i32
    %c0_i32_0 = arith.constant 0 : i32
    return %arg1, %arg0, %c0_i32 : i32, i32, i32
  }
  func.func @transform_1(%arg0: i32, %arg1: i32) -> (i32, i32) {
    %c0_i32 = arith.constant 0 : i32
    %c0_i32_0 = arith.constant 0 : i32
    %c0_i32_1 = arith.constant 0 : i32
    return %c0_i32, %c0_i32_0 : i32, i32
  }
  func.func @transform_2(%arg0: i32, %arg1: i32) -> (i32, i32) {
    %c0_i32 = arith.constant 0 : i32
    %c0_i32_0 = arith.constant 0 : i32
    return %arg0, %c0_i32 : i32, i32
  }
  func.func @transform_3(%arg0: i32, %arg1: i32) -> (i32, i32, i32) {
    %c0_i32 = arith.constant 0 : i32
    %c0_i32_0 = arith.constant 0 : i32
    return %arg1, %arg0, %c0_i32 : i32, i32, i32
  }
}

</mosaic_0001>

<bundles_post_ra>
// kernel: siglip_vision_embeddings.1
= control target key start
LH: loop header
LB: loop body
LE: loop exit
PB: predicated region body
PF: predicated region fallthrough
CT: control target
= control target key end

     0   :  { %8 = vsyncpa [#allocation3], 0  ;;  %s743_s0 = inlined_call_operand.vmem [shape: bf16[2,16,48], index: 0, kind: input, shape index: {}]   ;;  %s744_s1 = inlined_call_operand.vmem [shape: bf16[48,128], index: 1, kind: input, shape index: {}]   ;;  %s745_s2 = inlined_call_operand.vmem [shape: f32[16,128], index: 2, kind: input, shape index: {}]   ;;  %s746_s3 = inlined_call_operand.hbm [shape: f32[2,16,128], index: 3, kind: output, shape index: {}]  }
   0x1   :  { %10 = vsyncpa [#allocation3 + $0x1], 0  ;;  %s614_s12 = smov 0   ;;  %s616_s13 = smov 0  }
   0x2   :  { %s618_s14 = smov 0   ;;  %s620_s15 = smov 0  }
   0x3   :  { %s622_s16 = smov 0   ;;  %s624_s17 = smov 0  }
   0x4 LB: > { %s413_s18 = sadd.s32 4294967295, %s587_s17   ;;  %s414_s19 = sadd.s32 4294967294, %s587_s17   ;;  %s587_s17 = sphi %s624_s17, %s16_s17   ;;  %s583_s16 = sphi %s622_s16, %s753_s16   ;;  %s579_s15 = sphi %s620_s15, %s752_s15   ;;  %s575_s14 = sphi %s618_s14, %s751_s14   ;;  %s571_s13 = sphi %s616_s13, %s750_s13   ;;  %s567_s12 = sphi %s614_s12, %s749_s12  }
   0x5   : > { %s25_s20 = sadd.s32 1, %s583_s16  ;;  %s112_s21 = sadd.s32 1, %s575_s14 }
   0x6   : > { %p26_p0 = scmp.ge.s32.totalorder %s25_s20, 2  ;;  %p122_p1 = scmp.ne.s32.totalorder %s575_s14, %s571_s13 }
   0x7   : > { %p123_p2 = scmp.eq.s32.totalorder %s413_s18, 1  ;;  %p128_p3 = scmp.ne.s32.totalorder %s571_s13, %s567_s12 }
   0x8   : > { %s755_s20 = smov (%p26_p0, %s25_s20), 0  ;;  %p129_p5 = scmp.eq.s32.totalorder %s414_s19, 1 }
   0x9   : > { %p654_p4 = por %p123_p2, %p122_p1  ;;  %s107_s23 = ssub.s32 %s583_s16, %s755_s20 }
   0xa   : > { %p418_p6 = scmp.ge.s32.totalorder %s587_s17, 1  ;;  %p110_p7 = scmp.eq.s32.totalorder %s107_s23, 0 }
   0xb   : > { %p661_p8 = por %p129_p5, %p128_p3  ;;  %p172_p9 = scmp.lt.s32.totalorder %s587_s17, 3 }
   0xc   : > { %s667_s25 = scalar_select %p110_p7, %s575_s14, %s112_s21  }
   0xd   : > { %p173_p10 = pnand %p418_p6, %p172_p9 }
   0xe   : > { %p206_p11 = scmp.lt.s32.totalorder (!%p173_p10), %s579_s15, 1  ;;  %s202_s10 = sand.u32 (!%p173_p10), 1, %s571_s13  }
   0xf   : > { %176 = sbr.rel (%p173_p10) target bundleno = 246 (0xf6), region = 32  ;;  %s419_s11 = sshll.u32 (!%p173_p10), %s202_s10, 4 }
  0x10   : > { %s204_s21 = scalar_lea.vmem (!%p173_p10), [#allocation2], %s419_s11  ;;  %s433_s26 = sshll.u32 (!%p173_p10), %s579_s15, 8 }
  0x11   : > { %s319_s23 = sshll.u32 (!%p173_p10), %s204_s21, 4  ;;  %s696_s4 = scalar_lea.hbm (!%p173_p10), %s746_s3, %s433_s26  ;;  %s691_s23 = int_to_ptr.vmem [resolvable:$true] %s319_s23 }
  0x12   : > { %s511_s5 = scalar_lea.vmem (!%p173_p10), %s691_s23, 256 }
  0x13   : > { %p512_p12 = scmp.ne.s32.totalorder (!%p173_p10), %s691_s23, %s511_s5 }
  0x14   : > { %v507_v0 = vld [vmem:[%s744_s1 + $0x10] sm:$0xff]   ;;  %v589_v1 = vmov 0.0   ;;  %v508_v2 = vld [vmem:[%s744_s1 + $0x8] sm:$0xff]   ;;  %vm590_vm0 = vmmov 0   ;;  %s207_s30 = scalar_select %p206_p11, %s579_s15, 1  ;;  %v509_v3 = vld [vmem:[%s744_s1] sm:$0xff]  }
  0x15   : > { %438 = vmatprep.subr.bf16.mxu0 %v589_v1  ;;  %444 = vmatprep.mubr.msk.bf16.mxu0 %vm590_vm0, %v589_v1  ;;  %vm256_vm1 = vcmask 392192   ;;  %v229_v5 = vld [vmem:[%s745_s2] sm:$0xff]  ;;  %v230_v9 = vld [vmem:[%s745_s2 + $0x8] sm:$0xff]  ;;  %s698_s15 = scalar_lea.sflag [#allocation3], %s202_s10  ;;  %p513_p13 = pnand %p512_p12, %p654_p4 }
  0x16   : > { %439 = vmatpush3.bf16.msra.mxu0 %v507_v0  ;;  %s432_s6 = sshll.u32 %s207_s30, 3 }
  0x17   : > { %440 = vmatprep.subr.bf16.mxu0 %v589_v1  ;;  %s213_s9 = scalar_lea.vmem %s743_s0, %s432_s6  ;;  %p514_p0 = pneg %p513_p13 }
  0x18   : > { %v510_v4 = vld [vmem:[%s213_s9] sm:$0xff]   ;;  %s591_s6 = smov [#allocation2]  }
  0x19   : > { %s515_s7 = sshll.u32 %s591_s6, 4  ;;  %s516_s7 = int_to_ptr.vmem [resolvable:$false] %s515_s7 }
  0x1a   : > { %441 = vmatpush3.bf16.msra.mxu0 %v508_v2  ;;  %s517_s8 = scalar_lea.vmem %s516_s7, 512  ;;  %p518_p1 = scmp.lt.s32.totalorder %s691_s23, %s516_s7 }
  0x1b   : > { %442 = vmatprep.subr.bf16.mxu0 %v589_v1  ;;  %p519_p2 = scmp.lt.s32.totalorder %s517_s8, %s511_s5 }
  0x1d   : > { %p520_p3 = por %p519_p2, %p518_p1 }
  0x1e   : > { %443 = vmatpush3.bf16.msra.mxu0 %v509_v3 }
  0x1f   : > { %p521_p5 = pnand %p520_p3, %p514_p0 }
  0x21   : > { %445 = vmatmul.mubr.msk.bf16.vlgmr.msra.gmra.mxu0 %vm256_vm1, %v510_v4 }
  0xe1   : > { %v294_v6 = vpop.f32.mrf.mxu0 }
  0xe2   : > { %v295_v7 = vadd.f32 %v294_v6, %v229_v5 }
  0xe3   : > { %v446_v8 = vpop.f32.mrf.mxu0 }
  0xe4   : > { %301 = vst [vmem:[%s204_s21] sm:$0xff] %v295_v7 }
  0xe5   : > { %v297_v10 = vpop.f32.mrf.mxu0 }
  0xe6   : > { %v298_v11 = vadd.f32 %v297_v10, %v230_v9 }
  0xe7   : > { %v447_v12 = vpop.f32.mrf.mxu0 }
  0xe8   : > { %302 = vst [vmem:[%s204_s21 + $0x8] sm:$0xff] %v298_v11 }
  0xe9   : > { %524 = shalt.err (!%p521_p5)
}
  0xea   : > { %s525_s9 = scalar_lea.hbm %s696_s4, 256  ;;  %s529_s18 = scalar_lea.hbm %s746_s3, 512 }
  0xeb   : > { %p526_p6 = scmp.ne.s32.totalorder %s696_s4, %s525_s9  ;;  %p530_p10 = scmp.lt.s32.totalorder %s696_s4, %s746_s3 }
  0xec   : > { %p531_p11 = scmp.lt.s32.totalorder %s529_s18, %s525_s9 }
  0xed   : > { %p527_p7 = pnand %p526_p6, %p654_p4 }
  0xee   : > { %p532_p12 = por %p531_p11, %p530_p10 }
  0xef   : > { %p528_p9 = pneg %p527_p7 }
  0xf1   : > { %p533_p13 = pnand %p532_p12, %p528_p9 }
  0xf3   : > { %536 = shalt.err (!%p533_p13)
}
  0xf4   : > { %s592_s26 = smov 128   ;;  %s593_s27 = smov 8  }
  0xf5   : > { %448 = dma.vmem_to_hbm [thread:$0]  (%p654_p4), %s691_s23, 256, %s696_s4, %s698_s15, %s592_s26, %s592_s26, %s593_s27  }
  0xf6 PF: > { %p454_p0 = scmp.ge.s32.totalorder %s587_s17, 2  ;;  %s334_s28 = sand.u32 1, %s567_s12  }
  0xf7   : > { %s335_s29 = scalar_lea.sflag [#allocation3], %s334_s28 }
  0xf8   : > { %p451_p1 = pnand %p454_p0, %p661_p8 }
  0xfa   : > { %p452_p2 = pneg %p451_p1 }
  0xfc   : > { %562 = dma.done.wait (%p452_p2), %s335_s29, 256  }
  0xfd   : > { %564 = vsyncadd (%p452_p2), %s335_s29, 4294967040  ;;  %s16_s17 = sadd.s32 1, %s587_s17   ;;  %s749_s12 = smov %s571_s13 }
  0xfe   : > { %p13_p3 = scmp.ge.s32.totalorder %s16_s17, 4   ;;  %s750_s13 = smov %s575_s14 }
  0xff   : > { %s751_s14 = smov %s667_s25  ;;  %s752_s15 = smov %s583_s16 }
 0x100   : > { %s753_s16 = smov %s755_s20  ;;  %15 = sbr.rel (!%p13_p3) target bundleno = 4 (0x4), region = 70 }
 0x105   :  { %340 = vsyncpa [#allocation3], 1 }
 0x106   :  { %342 = vsyncpa [#allocation3 + $0x1], 1 }

</bundles_post_ra>
